<compile_context>
chip_gen: v7x
topology: tpu7x:2x2x1
jax: 0.10.0
libtpu: 0.0.40
codegen_flags: <defaults>
</compile_context>

<pallas_src>
import jax
import jax.numpy as jnp
import numpy as np
from jax.experimental import pallas as pl
from jax.experimental.pallas import tpu as pltpu


# ---------------------------------------------------------------------------
# Path A: fully fused kernel — Nb samples resident per grid step.
# ---------------------------------------------------------------------------
def _cse_fused_kernel(x_ref, w1t_ref, w2t_ref, o_ref):
    # x_ref: (Nb, C, HW); w1t_ref: (C, Cr) (pre-scaled by 1/HW); w2t_ref: (Cr, C)
    x = x_ref[...]
    # AdaptiveAvgPool2d((1,1)) == mean over spatial; 1/HW is folded into w1t,
    # so a plain lane-reduction sum suffices.  f32 only inside the reduction.
    pooled = jnp.sum(x.astype(jnp.float32), axis=2)                      # (Nb, C)
    s1 = jnp.maximum(
        jnp.dot(pooled, w1t_ref[...], preferred_element_type=jnp.float32), 0.0
    )                                                                    # (Nb, Cr)
    z = jnp.dot(s1, w2t_ref[...], preferred_element_type=jnp.float32)    # (Nb, C)
    gate = jax.nn.sigmoid(z).astype(x.dtype)                             # (Nb, C)
    # Gating multiply in the input dtype: no full-slab f32 temporary.
    o_ref[...] = x * gate[:, :, None]


# ---------------------------------------------------------------------------
# Path B pass 1: streamed per-channel sums (excite matmuls hoisted to JAX).
# ---------------------------------------------------------------------------
def _cse_pool_kernel(x_ref, s_ref, acc_ref):
    # x_ref: (1, C, Thw); s_ref: (1, C, 1) float32 output; acc_ref: (C, 1) f32.
    t = pl.program_id(1)

    @pl.when(t == 0)
    def _():
        acc_ref[...] = jnp.zeros_like(acc_ref)

    acc_ref[...] += jnp.sum(x_ref[0].astype(jnp.float32), axis=1, keepdims=True)

    @pl.when(t == pl.num_programs(1) - 1)
    def _():
        s_ref[0] = acc_ref[...]


# ---------------------------------------------------------------------------
# Path B pass 2: streamed channel-wise gating multiply (native dtype).
# ---------------------------------------------------------------------------
def _cse_gate_kernel(x_ref, s_ref, o_ref):
    # x_ref: (1, C, Thw); s_ref: (1, C, 1) float32; o_ref: (1, C, Thw)
    o_ref[0] = x_ref[0] * s_ref[0].astype(x_ref.dtype)


def _round_up(x, m):
    return ((x + m - 1) // m) * m


def _vmem_caps():
    """(block budget bytes, scoped vmem limit bytes) for the current TPU gen."""
    cap = 64 * 1024 * 1024  # conservative default: v7x per-TensorCore VMEM
    try:
        cap = int(pltpu.get_tpu_info().vmem_capacity_bytes)
    except Exception:
        pass
    # Budget for pipelined data blocks: 0.6 of VMEM, never above 48 MiB.
    budget = min(int(cap * 0.60), 48 * 1024 * 1024)
    # Explicit scoped-VMEM limit handed to Mosaic: capped at 64 MiB even on
    # 128 MiB parts (no roofline benefit beyond that, better compile robustness).
    limit = min(int(cap * 0.85), 64 * 1024 * 1024)
    return budget, limit


def cse_block(x_nchw, w1, w2, *, force_two_pass=False, spatial_tile=None):
    """Channel squeeze-and-excitation.

    x_nchw: (N, C, H, W); w1: (C//r, C) == conv1.weight[:, :, 0, 0];
    w2: (C, C//r) == conv2.weight[:, :, 0, 0]. Returns (N, C, H, W).
    """
    N, C, H, W = x_nchw.shape
    HW = H * W
    Cr = w1.shape[0]
    itemsize = jnp.dtype(x_nchw.dtype).itemsize

    budget, vmem_limit = _vmem_caps()

    # Fold the 1/HW average-pool scale into conv1's weight (sum instead of mean).
    w1s = w1.astype(jnp.float32) * jnp.float32(1.0 / HW)   # (Cr, C)
    w2f = w2.astype(jnp.float32)                           # (C, Cr)

    x_flat = x_nchw.reshape(N, C, HW)

    slab_bytes = C * HW * itemsize                 # one sample, in OR out
    f32_temp = C * HW * 4 if itemsize < 4 else 0   # pooled-reduction f32 temp
    weight_bytes = 2 * (Cr * C) * 4
    headroom = 2 * 1024 * 1024                     # Mosaic internal scratch etc.

    def fused_cost(nb):
        # 2x double-buffered input + 2x double-buffered output + temps.
        return 4 * nb * slab_bytes + nb * f32_temp + weight_bytes + headroom

    nb = None
    if not force_two_pass:
        target_block = 8 * 1024 * 1024
        divisors = [d for d in range(1, N + 1) if N % d == 0]
        feasible = [d for d in divisors if fused_cost(d) <= budget]
        if feasible:
            # Prefer enough grid steps for real pipelining (>= ~4 per v7x TC)
            # and per-step blocks <= ~8 MiB (already ~HBM roofline).
            want_steps = min(N, 8)
            good = [d for d in feasible
                    if N // d >= want_steps and d * slab_bytes <= target_block]
            if good:
                nb = max(good)
            else:
                ok = [d for d in feasible if N // d >= min(N, 2)]
                nb = max(ok) if ok else max(feasible)

    if nb is not None:
        # ------------------- Path A: fully fused, Nb samples per step --------
        # No wrapper-side pad/slice: the last block dim is the full HW extent,
        # so a ragged tail only costs a masked vst on the final vreg.
        grid = (N // nb,)
        out_flat = pl.pallas_call(
            _cse_fused_kernel,
            out_shape=jax.ShapeDtypeStruct((N, C, HW), x_nchw.dtype),
            grid_spec=pltpu.PrefetchScalarGridSpec(
                num_scalar_prefetch=0,
                grid=grid,
                in_specs=[
                    pl.BlockSpec((nb, C, HW), lambda n: (n, 0, 0)),
                    pl.BlockSpec((C, Cr), lambda n: (0, 0)),
                    pl.BlockSpec((Cr, C), lambda n: (0, 0)),
                ],
                out_specs=pl.BlockSpec((nb, C, HW), lambda n: (n, 0, 0)),
            ),
            compiler_params=pltpu.CompilerParams(
                dimension_semantics=("parallel",),
                vmem_limit_bytes=vmem_limit,
            ),
        )(x_flat, w1s.T, w2f.T)
        return out_flat.reshape(N, C, H, W)

    # ------------- Path B: slab exceeds VMEM -> two streamed passes ----------
    # Streaming tile (in 128-lane vreg units): sized from the budget assuming
    # in+out double-buffering for pass 2, capped at 8 MiB per block; tile count
    # chosen first so spatial padding stays small relative to HW.
    HW_pad128 = _round_up(HW, 128)
    V = HW_pad128 // 128
    t_bytes_max = min(8 * 1024 * 1024, max(1, budget // 4))
    v_max = max(1, t_bytes_max // (C * itemsize * 128))
    if spatial_tile is not None:
        v_max = max(1, int(spatial_tile) // 128)
    v_max = min(v_max, V)
    # Prefer an exact divisor of V (keeps padding < 128 elements); otherwise
    # split V into ceil(V / v_max) near-equal tiles.
    div = max(d for d in range(1, v_max + 1) if V % d == 0)
    if 2 * div >= v_max:
        t_v = div
    else:
        n_tiles = -(-V // v_max)
        t_v = -(-V // n_tiles)
    t_hw = t_v * 128
    n_t = -(-V // t_v)
    HW_final = n_t * t_hw
    if HW_final != HW:
        x_flat = jnp.pad(x_flat, ((0, 0), (0, 0), (0, HW_final - HW)))

    # Pass 1: per-channel sums (zero padding is exact since we only sum).
    pooled = pl.pallas_call(
        _cse_pool_kernel,
        out_shape=jax.ShapeDtypeStruct((N, C, 1), jnp.float32),
        grid_spec=pltpu.PrefetchScalarGridSpec(
            num_scalar_prefetch=0,
            grid=(N, n_t),
            in_specs=[pl.BlockSpec((1, C, t_hw), lambda n, t: (n, 0, t))],
            out_specs=pl.BlockSpec((1, C, 1), lambda n, t: (n, 0, 0)),
            scratch_shapes=[pltpu.VMEM((C, 1), jnp.float32)],
        ),
        compiler_params=pltpu.CompilerParams(
            dimension_semantics=("parallel", "arbitrary"),
            vmem_limit_bytes=vmem_limit,
        ),
    )(x_flat)

    # Tiny excite (two GEMMs + sigmoid) hoisted out of the kernel: << 1% of
    # runtime, removes the serialized MXU tail from the last tile per sample.
    pooled2d = pooled[:, :, 0]                               # (N, C) raw sums
    s1 = jnp.maximum(pooled2d @ w1s.T, 0.0)                  # (N, Cr), 1/HW folded
    gate = jax.nn.sigmoid(s1 @ w2f.T)                        # (N, C) float32
    gate3 = gate[:, :, None]                                 # (N, C, 1)

    # Pass 2: streamed channel-wise gating multiply.
    out_flat = pl.pallas_call(
        _cse_gate_kernel,
        out_shape=jax.ShapeDtypeStruct((N, C, HW_final), x_nchw.dtype),
        grid_spec=pltpu.PrefetchScalarGridSpec(
            num_scalar_prefetch=0,
            grid=(N, n_t),
            in_specs=[
                pl.BlockSpec((1, C, t_hw), lambda n, t: (n, 0, t)),
                pl.BlockSpec((1, C, 1), lambda n, t: (n, 0, 0)),
            ],
            out_specs=pl.BlockSpec((1, C, t_hw), lambda n, t: (n, 0, t)),
        ),
        compiler_params=pltpu.CompilerParams(
            dimension_semantics=("parallel", "parallel"),
            vmem_limit_bytes=vmem_limit,
        ),
    )(x_flat, gate3)

    if HW_final != HW:
        out_flat = out_flat[:, :, :HW]
    return out_flat.reshape(N, C, H, W)


def cse_block_ref(x_nchw, w1, w2):
    """Pure-JAX reference matching the PyTorch module."""
    pooled = jnp.mean(x_nchw, axis=(2, 3))                  # (N, C)
    s1 = jnp.maximum(pooled @ w1.T, 0.0)                    # (N, Cr)
    s2 = jax.nn.sigmoid(s1 @ w2.T)                          # (N, C)
    return x_nchw * s2[:, :, None, None]


if __name__ == "__main__":
    # Small shapes consistent with the module: inplanes=8, reduce_ratio=4.
    N, C, H, W = 2, 8, 16, 16
    reduce_ratio = 4
    Cr = C // reduce_ratio

    key = jax.random.PRNGKey(0)
    kx, k1, k2 = jax.random.split(key, 3)
    x = jax.random.normal(kx, (N, C, H, W), dtype=jnp.float32)
    # Deterministic "synthetic checkpoint" weights (1x1 convs -> plain matrices).
    w1 = jax.random.normal(k1, (Cr, C), dtype=jnp.float32) * 0.1   # conv1.weight (Cr,C,1,1)
    w2 = jax.random.normal(k2, (C, Cr), dtype=jnp.float32) * 0.1   # conv2.weight (C,Cr,1,1)

    ref = cse_block_ref(x, w1, w2)

    # Path A: fused, batched-per-block kernel (no spatial padding / slicing).
    out_fused = jax.block_until_ready(cse_block(x, w1, w2))
    np.testing.assert_allclose(np.asarray(out_fused), np.asarray(ref),
                               rtol=1e-5, atol=1e-5)

    # Path B: two-pass streamed fallback (forced; small spatial tile so the
    # multi-tile accumulation loop is actually exercised).
    out_stream = jax.block_until_ready(
        cse_block(x, w1, w2, force_two_pass=True, spatial_tile=128))
    np.testing.assert_allclose(np.asarray(out_stream), np.asarray(ref),
                               rtol=1e-5, atol=1e-5)

    print("KERNEL_OK")
</pallas_src>

<mosaic_0001>
module attributes {stable_mosaic.version = 11 : i64} {
  func.func @_cse_fused_kernel(%arg0: i32, %arg1: memref<1x8x256xf32, #tpu.memory_space<vmem>>, %arg2: memref<8x2xf32, #tpu.memory_space<vmem>>, %arg3: memref<2x8xf32, #tpu.memory_space<vmem>>, %arg4: memref<1x8x256xf32, #tpu.memory_space<vmem>>) attributes {dimension_semantics = [#tpu.dimension_semantics<parallel>], iteration_bounds = array<i64: 2>, scalar_prefetch = 0 : i64, scratch_operands = 0 : i64, tpu.core_type = #tpu.core_type<tc>, window_params = [{transform_indices = @transform_0, window_bounds = array<i64: 1, 8, 256>}, {pipeline_mode = #tpu.pipeline_mode<synchronous>, transform_indices = @transform_1, window_bounds = array<i64: 8, 2>}, {pipeline_mode = #tpu.pipeline_mode<synchronous>, transform_indices = @transform_2, window_bounds = array<i64: 2, 8>}, {transform_indices = @transform_3, window_bounds = array<i64: 1, 8, 256>}]} {
    %c0 = arith.constant 0 : index
    %c0_0 = arith.constant 0 : index
    %c0_1 = arith.constant 0 : index
    %0 = vector.load %arg1[%c0, %c0_0, %c0_1] : memref<1x8x256xf32, #tpu.memory_space<vmem>>, vector<1x8x256xf32>
    %cst = arith.constant dense<0.000000e+00> : vector<1x8xf32>
    %1 = vector.multi_reduction <add>, %0, %cst [2] : vector<1x8x256xf32> to vector<1x8xf32>
    %c0_2 = arith.constant 0 : index
    %c0_3 = arith.constant 0 : index
    %2 = vector.load %arg2[%c0_2, %c0_3] : memref<8x2xf32, #tpu.memory_space<vmem>>, vector<8x2xf32>
    %cst_4 = arith.constant dense<0.000000e+00> : vector<1x2xf32>
    %3 = tpu.matmul %1, %2, %cst_4 {dimension_numbers = #tpu.dot_dimension_numbers<[1], [0], [0], [1], [0, 0, 1, 1], [], []>} : vector<1x8xf32>, vector<8x2xf32>, vector<1x2xf32> -> vector<1x2xf32>
    %cst_5 = arith.constant 0.000000e+00 : f32
    %4 = vector.broadcast %cst_5 : f32 to vector<1x2xf32>
    %5 = arith.maximumf %3, %4 : vector<1x2xf32>
    %c0_6 = arith.constant 0 : index
    %c0_7 = arith.constant 0 : index
    %6 = vector.load %arg3[%c0_6, %c0_7] : memref<2x8xf32, #tpu.memory_space<vmem>>, vector<2x8xf32>
    %cst_8 = arith.constant dense<0.000000e+00> : vector<1x8xf32>
    %7 = tpu.matmul %5, %6, %cst_8 {dimension_numbers = #tpu.dot_dimension_numbers<[1], [0], [0], [1], [0, 0, 1, 1], [], []>} : vector<1x2xf32>, vector<2x8xf32>, vector<1x8xf32> -> vector<1x8xf32>
    %8 = arith.negf %7 : vector<1x8xf32>
    %9 = math.exp %8 : vector<1x8xf32>
    %cst_9 = arith.constant 1.000000e+00 : f32
    %10 = vector.broadcast %cst_9 : f32 to vector<1x8xf32>
    %11 = arith.addf %10, %9 : vector<1x8xf32>
    %12 = arith.divf %10, %11 : vector<1x8xf32>
    %13 = vector.shape_cast %12 : vector<1x8xf32> to vector<1x8x1xf32>
    %14 = vector.broadcast %13 : vector<1x8x1xf32> to vector<1x8x256xf32>
    %15 = arith.mulf %0, %14 : vector<1x8x256xf32>
    %c0_10 = arith.constant 0 : index
    %c0_11 = arith.constant 0 : index
    %c0_12 = arith.constant 0 : index
    %16 = vector.load %arg4[%c0_10, %c0_11, %c0_12] : memref<1x8x256xf32, #tpu.memory_space<vmem>>, vector<1x8x256xf32>
    tpu.vector_store %arg4[%c0_10, %c0_11, %c0_12], %15 {strides = array<i32>} : memref<1x8x256xf32, #tpu.memory_space<vmem>>, vector<1x8x256xf32>,
    return
  }
  func.func @transform_0(%arg0: i32) -> (i32, i32, i32) {
    %c0_i32 = arith.constant 0 : i32
    %c0_i32_0 = arith.constant 0 : i32
    %c0_i32_1 = arith.constant 0 : i32
    return %arg0, %c0_i32, %c0_i32_0 : i32, i32, i32
  }
  func.func @transform_1(%arg0: i32) -> (i32, i32) {
    %c0_i32 = arith.constant 0 : i32
    %c0_i32_0 = arith.constant 0 : i32
    %c0_i32_1 = arith.constant 0 : i32
    return %c0_i32, %c0_i32_0 : i32, i32
  }
  func.func @transform_2(%arg0: i32) -> (i32, i32) {
    %c0_i32 = arith.constant 0 : i32
    %c0_i32_0 = arith.constant 0 : i32
    %c0_i32_1 = arith.constant 0 : i32
    return %c0_i32, %c0_i32_0 : i32, i32
  }
  func.func @transform_3(%arg0: i32) -> (i32, i32, i32) {
    %c0_i32 = arith.constant 0 : i32
    %c0_i32_0 = arith.constant 0 : i32
    %c0_i32_1 = arith.constant 0 : i32
    return %arg0, %c0_i32, %c0_i32_0 : i32, i32, i32
  }
}

</mosaic_0001>

<bundles_post_ra>
// kernel: tpu_custom_call.1
= control target key start
LH: loop header
LB: loop body
LE: loop exit
PB: predicated region body
PF: predicated region fallthrough
CT: control target
= control target key end

     0   :  { %8 = vsyncpa [#allocation3], 0  ;;  %s834_s0 = inlined_call_operand.hbm [shape: f32[2,8,256], index: 0, kind: input, shape index: {}]   ;;  %s835_s1 = inlined_call_operand.vmem [shape: f32[8,2], index: 1, kind: input, shape index: {}]   ;;  %s836_s2 = inlined_call_operand.vmem [shape: f32[2,8], index: 2, kind: input, shape index: {}]   ;;  %s837_s3 = inlined_call_operand.hbm [shape: f32[2,8,256], index: 3, kind: output, shape index: {}]  }
   0x1   :  { %10 = vsyncpa [#allocation3 + $0x1], 0 }
   0x2   :  { %11 = vsyncpa [#allocation4], 0 }
   0x3   :  { %13 = vsyncpa [#allocation4 + $0x1], 0  ;;  %s663_s12 = smov 0   ;;  %s665_s13 = smov 0  }
   0x4   :  { %s667_s14 = smov 0   ;;  %s669_s15 = smov 0  }
   0x5 LB: > { %s684_s16 = sadd.s32 4294967295, %s637_s15   ;;  %s455_s17 = sadd.s32 4294967294, %s637_s15   ;;  %s637_s15 = sphi %s669_s15, %s852_s15   ;;  %s633_s14 = sphi %s667_s14, %s851_s14   ;;  %s629_s13 = sphi %s665_s13, %s850_s13   ;;  %s625_s12 = sphi %s663_s12, %s849_s12  }
   0x6   : > { %s688_s18 = sadd.s32 1, %s637_s15   ;;  %s26_s19 = sadd.s32 1, %s633_s14 }
   0x7   : > { %s23_s20 = ssub.s32 %s637_s15, %s688_s18  ;;  %p33_p0 = scmp.ne.s32.totalorder %s633_s14, %s629_s13 }
   0x8   : > { %p24_p1 = scmp.eq.s32.totalorder %s23_s20, 0  ;;  %p34_p2 = scmp.eq.s32.totalorder %s637_s15, 0 }
   0x9   : > { %p39_p3 = scmp.ne.s32.totalorder %s629_s13, %s625_s12  ;;  %p40_p4 = scmp.eq.s32.totalorder %s684_s16, 0 }
   0xa   : > { %s700_s21 = scalar_select %p24_p1, %s633_s14, %s26_s19  }
   0xb   : > { %p702_p5 = por %p34_p2, %p33_p0  ;;  %p706_p6 = por %p40_p4, %p39_p3 }
   0xc   : > { %p105_p7 = scmp.eq.s32.totalorder %s684_s16, 1  ;;  %p111_p8 = scmp.eq.s32.totalorder %s455_s17, 1 }
   0xd   : > { %p501_p10 = scmp.lt.s32.totalorder %s637_s15, 2  ;;  %s137_s26 = sand.u32 1, %s633_s14  }
   0xe   : > { %p713_p11 = por %p105_p7, %p33_p0  ;;  %p717_p12 = por %p111_p8, %p39_p3 }
   0xf   : > { %s473_s27 = sshll.u32 %s637_s15, 8  ;;  %s458_s28 = sshll.u32 %s137_s26, 4 }
  0x10   : > { %s841_s24 = scalar_select %p713_p11, 1, 0 }
  0x11   : > { %s842_s25 = scalar_select %p717_p12, 1, 0 }
  0x12   : > { %s726_s4 = scalar_lea.hbm %s834_s0, %s473_s27  ;;  %s141_s5 = scalar_lea.vmem [#allocation2], %s458_s28 }
  0x13   : > { %s149_s6 = sshll.u32 %s141_s5, 4  ;;  %p730_p13 = pnand %p501_p10, %p702_p5  ;;  %s734_s6 = int_to_ptr.vmem [resolvable:$true] %s149_s6 }
  0x14   : > { %s138_s8 = scalar_lea.sflag [#allocation3], %s137_s26  ;;  %s541_s9 = scalar_lea.hbm %s726_s4, 256 }
  0x15   : > { %p542_p2 = scmp.ne.s32.totalorder %s726_s4, %s541_s9  ;;  %p543_p3 = pneg %p730_p13 }
  0x16   : > { %s546_s17 = scalar_lea.hbm %s834_s0, 512  ;;  %p547_p5 = scmp.lt.u32.totalorder %s726_s4, %s834_s0 }
  0x17   : > { %p544_p4 = pnand %p543_p3, %p542_p2  ;;  %p548_p8 = scmp.lt.u32.totalorder %s546_s17, %s541_s9 }
  0x18   : > { %p550_p9 = scmp.lt.u32.totalorder %s541_s9, %s726_s4 }
  0x19   : > { %p545_p7 = pneg %p544_p4  ;;  %p549_p10 = por %p548_p8, %p547_p5 }
  0x1b   : > { %p551_p0 = por %p550_p9, %p549_p10 }
  0x1d   : > { %p552_p1 = pnand %p551_p0, %p545_p7 }
  0x1f   : > { %555 = shalt.err (!%p552_p1)
}
  0x20   : > { %s556_s22 = scalar_lea.vmem %s734_s6, 256  ;;  %s639_s26 = smov [#allocation2]  }
  0x21   : > { %p557_p2 = scmp.ne.s32.totalorder %s734_s6, %s556_s22  ;;  %s561_s27 = sshll.u32 %s639_s26, 4  ;;  %s562_s27 = int_to_ptr.vmem [resolvable:$false] %s561_s27 }
  0x22   : > { %s563_s28 = scalar_lea.vmem %s562_s27, 512  ;;  %p564_p11 = scmp.lt.s32.totalorder %s734_s6, %s562_s27 }
  0x23   : > { %p559_p4 = pnand %p557_p2, %p543_p3  ;;  %p565_p5 = scmp.lt.s32.totalorder %s563_s28, %s556_s22 }
  0x25   : > { %p560_p12 = pneg %p559_p4  ;;  %p566_p8 = por %p565_p5, %p564_p11 }
  0x27   : > { %p567_p9 = pnand %p566_p8, %p560_p12 }
  0x29   : > { %570 = shalt.err (!%p567_p9)
}
  0x2a   : > { %496 = dma.hbm_to_vmem [thread:$0]  (!%p730_p13), %s726_s4, 256, %s734_s6, %s138_s8  }
  0x2b   : > { %p844_p0 = scmp.lt.s32.totalorder %s637_s15, 3  ;;  %p845_p1 = scmp.ge.s32.totalorder %s637_s15, 1 }
  0x2d   : > { %p155_p3 = pnand %p845_p1, %p844_p0 }
  0x2e   : > { %s768_s29 = sand.u32 (!%p155_p3), 1, %s629_s13  }
  0x2f   : > { %158 = sbr.rel (%p155_p3) target bundleno = 787 (0x313), region = 32  ;;  %s462_s30 = sshll.u32 (!%p155_p3), %s768_s29, 4 }
  0x30   : > { %s161_s5 = scalar_lea.sflag (!%p155_p3), [#allocation3], %s768_s29  ;;  %s164_s7 = scalar_lea.vmem (!%p155_p3), [#allocation2], %s462_s30 }
  0x36   : > { %616 = dma.done.wait (%p706_p6), %s161_s5, 256  }
  0x37   : > { %618 = vsyncadd (%p706_p6), %s161_s5, 4294967040  ;;  %v187_v0 = vld [vmem:[%s164_s7] sm:$0xff]  ;;  %v188_v1 = vld [vmem:[%s164_s7 + $0x8] sm:$0xff]  ;;  %v640_v3 = vmov 0.0   ;;  %vm641_vm0 = vmmov 0   ;;  %v194_v5 = vlaneseq  ;;  %vm200_vm1 = vcmask 64512  }
  0x38   : > { %v189_v2 = vadd.f32 %v188_v1, %v187_v0  ;;  %479 = vmatprep.subr.mxu0 %v640_v3  ;;  %v192_v4 = vld [vmem:[%s835_s1] sm:$0xff]  ;;  %484 = vmatprep.subr.mxu1 %v640_v3  ;;  %vm279_vm2 = vcmask 1041408   ;;  %vm275_vm3 = vcmask 15360   ;;  %s474_s9 = sshll.u32 %s684_s16, 8  ;;  %s186_s10 = scalar_lea.vmem [#allocation5], %s462_s30 }
  0x39   : > { %480 = vmatpush3.msra.mxu0 %v192_v4  ;;  %481 = vmatprep.mubr.msk.f32.mxu0 %vm641_vm0, %v640_v3  ;;  %v195_v6 = vand.u32 127, %v194_v5  ;;  %v197_v7 = vshrl.u32 %v194_v5, 7  ;;  %v274_v11 = vld [vmem:[%s836_s2] sm:$0x3]  ;;  %s385_s11 = sshll.u32 %s186_s10, 4  ;;  %s790_s20 = scalar_lea.hbm %s837_s3, %s474_s9  ;;  %s792_s11 = int_to_ptr.vmem [resolvable:$true] %s385_s11 }
  0x3a   : > { %190 = vadd.xlane.f32.xlu0 %v189_v2  ;;  %486 = vmatprep.mubr.msk.f32.mxu1 %vm641_vm0, %v640_v3  ;;  %s371_s22 = scalar_lea.sflag [#allocation4], %s768_s29  ;;  %s571_s16 = scalar_lea.vmem %s792_s11, 256 }
  0x3b   : > { %v198_v8 = vsub.s32 %v195_v6, %v197_v7  ;;  %485 = vmatpush3.msk.msra.mxu1 %vm279_vm2, %v274_v11  ;;  %v361_v20 = vsub.s32 0, %v197_v7  ;;  %p572_p6 = scmp.ne.s32.totalorder %s792_s11, %s571_s16  ;;  %p846_p11 = scmp.ne.s32.totalorder %s841_s24, 0 }
  0x3c   : > { %s642_s26 = smov [#allocation5]  }
  0x3d   : > { %p573_p12 = pnand %p572_p6, %p846_p11  ;;  %s575_s27 = sshll.u32 %s642_s26, 4  ;;  %s576_s27 = int_to_ptr.vmem [resolvable:$false] %s575_s27 }
  0x3e   : > { %s577_s28 = scalar_lea.vmem %s576_s27, 512  ;;  %p578_p7 = scmp.lt.s32.totalorder %s792_s11, %s576_s27 }
  0x3f   : > { %p574_p13 = pneg %p573_p12  ;;  %p579_p10 = scmp.lt.s32.totalorder %s577_s28, %s571_s16 }
  0x41   : > { %p580_p2 = por %p579_p10, %p578_p7 }
  0x43   : > { %p581_p4 = pnand %p580_p2, %p574_p13 }
  0xc7   : > { %v191_v9 = vpop.xlane.xlu0 %190 }
  0xc8   : > { %v199_v10 = vrot.slane %v191_v9, %v198_v8 }
  0xca   : > { %482 = vmatmul.mubr.msk.f32.vlgmr.msra.gmra.mrb[0].mxu0 %vm200_vm1, %v199_v10 }
 0x19d   : > { %v269_v12 = vpop.f32.mrb[0].mxu0 }
 0x19e   : > { %v273_v13 = vmax.f32 %v269_v12, 0.0  ;;  %v483_v14 = vpop.f32.mrb[1].mxu0 }
 0x1a0   : > { %487 = vmatmul.mubr.msk.f32.vlgmr.msra.gmra.mrb[0].mxu1 %vm275_vm3, %v273_v13 }
 0x273   : > { %v349_v15 = vpop.f32.mrb[0].mxu1 }
 0x274   : > { %v467_v16 = vmul.f32 -1.442695, %v349_v15  ;;  %v488_v17 = vpop.f32.mrb[1].mxu1 }
 0x276   : > { %537 = vpow2.f32 %v467_v16 }
 0x280   : > { %v538_v18 = vpop.eup %537 }
 0x281   : > { %v356_v19 = vadd.f32 1.0, %v538_v18 }
 0x283   : > { %539 = vrcp.f32 %v356_v19 }
 0x28d   : > { %v540_v21 = vpop.eup %539 }
 0x28e   : > { %v362_v22 = vrot.slane %v540_v21, %v361_v20 }
 0x290   : > { %364 = vbcast.lane.b32.xlu0 %v362_v22, 256 }
 0x302   : > { %v365_v23 = vpop.permute.xlu0 %364 }
 0x303   : > { %v366_v24 = vmul.f32 %v365_v23, %v187_v0  ;;  %v367_v25 = vmul.f32 %v365_v23, %v188_v1 }
 0x305   : > { %368 = vst [vmem:[%s186_s10] sm:$0xff] %v366_v24  ;;  %369 = vst [vmem:[%s186_s10 + $0x8] sm:$0xff] %v367_v25 }
 0x306   : > { %584 = shalt.err (!%p581_p4)
}
 0x307   : > { %s585_s29 = scalar_lea.hbm %s790_s20, 256  ;;  %s589_s7 = scalar_lea.hbm %s837_s3, 512 }
 0x308   : > { %p586_p5 = scmp.ne.s32.totalorder %s790_s20, %s585_s29  ;;  %p590_p0 = scmp.lt.u32.totalorder %s790_s20, %s837_s3 }
 0x309   : > { %p591_p1 = scmp.lt.u32.totalorder %s589_s7, %s585_s29  ;;  %p593_p6 = scmp.lt.u32.totalorder %s585_s29, %s790_s20 }
 0x30a   : > { %p587_p8 = pnand %p586_p5, %p846_p11 }
 0x30b   : > { %p592_p3 = por %p591_p1, %p590_p0 }
 0x30c   : > { %p588_p9 = pneg %p587_p8 }
 0x30d   : > { %p594_p12 = por %p593_p6, %p592_p3 }
 0x30f   : > { %p595_p13 = pnand %p594_p12, %p588_p9 }
 0x311   : > { %598 = shalt.err (!%p595_p13)
}
 0x312   : > { %491 = dma.vmem_to_hbm [thread:$0]  (%p846_p11), %s792_s11, 256, %s790_s20, %s371_s22  }
 0x313 PF: > { %s397_s23 = sand.u32 1, %s625_s12   ;;  %p847_p7 = scmp.ne.s32.totalorder %s842_s25, 0 }
 0x314   : > { %p848_p10 = scmp.ge.s32.totalorder %s637_s15, 2  ;;  %s398_s8 = scalar_lea.sflag [#allocation4], %s397_s23 }
 0x316   : > { %p498_p2 = pnand %p848_p10, %p847_p7 }
 0x318   : > { %620 = dma.done.wait (!%p498_p2), %s398_s8, 256  }
 0x319   : > { %622 = vsyncadd (!%p498_p2), %s398_s8, 4294967040  ;;  %p16_p4 = scmp.ge.s32.totalorder %s688_s18, 4   ;;  %s849_s12 = smov %s629_s13 }
 0x31a   : > { %s850_s13 = smov %s633_s14  ;;  %s851_s14 = smov %s700_s21 }
 0x31b   : > { %s852_s15 = smov %s688_s18  ;;  %18 = sbr.rel (!%p16_p4) target bundleno = 5 (0x5), region = 77 }
 0x322   :  { %403 = vsyncpa [#allocation3], 1 }
 0x323   :  { %405 = vsyncpa [#allocation3 + $0x1], 1 }
 0x324   :  { %406 = vsyncpa [#allocation4], 1 }
 0x325   :  { %408 = vsyncpa [#allocation4 + $0x1], 1 }

</bundles_post_ra>
